<compile_context>
chip_gen: v7x
topology: tpu7x:2x2x1
jax: 0.10.0
libtpu: 0.0.40
codegen_flags: <defaults>
</compile_context>

<pallas_src>
import numpy as np
import jax
import jax.numpy as jnp
from jax.experimental import pallas as pl
from jax.experimental.pallas import tpu as pltpu

_LANES = 128  # lane width; partial-sum outputs are kept lane-dense.


def _round_up(x, m):
    return (x + m - 1) // m * m


def _choose_tile_n(n, c, itemsize, budget_bytes=16 * 1024 * 1024):
    """Largest row tile (multiple of 8) whose live VMEM fits `budget_bytes`.

    Counts the lane-padded width (VMEM pads the last dim to 128 lanes), the
    double-buffered streamed logits tile in its HBM dtype, ~4 f32 (TILE_N, C)
    temporaries (f32 cast, exp, one-hot selects / iota) and the lane-padded
    i32 target double-buffer.
    """
    c_lanes = _round_up(max(c, 1), _LANES)
    per_row = (2 * c_lanes * itemsize      # double-buffered streamed logits tile
               + 4 * c_lanes * 4           # f32 temporaries inside the kernel
               + 2 * _LANES * 4)           # lane-padded i32 target double-buffer
    max_rows = max(8, budget_bytes // per_row)
    tile = min(2048, max_rows, _round_up(n, 8))   # big tiles amortize step overhead
    tile = max(8, (tile // 8) * 8)
    # v7x has 2 TensorCores: make sure the "parallel" grid axis has >= 2 steps
    # whenever the batch allows it (harmless no-op on single-TC v5e/v6e).
    if n > 8 and tile >= n:
        tile = max(8, _round_up(-(-n // 2), 8))
    return tile


def _make_ce_kernel(n_rows, tile_n, ragged):
    def _ce_kernel(logits_ref, tgt_ref, w_ref, loss_ref, wsum_ref):
        # logits_ref: (TILE_N, C) in HBM dtype; cast AFTER the load (half the
        # HBM bytes when the caller passes bf16).
        logits = logits_ref[...].astype(jnp.float32)
        tgt = tgt_ref[...]                     # (TILE_N, 1) i32
        w = w_ref[...]                         # (1, C)     f32

        # numerically-stable logsumexp along the class (lane) axis
        m = jnp.max(logits, axis=-1, keepdims=True)
        lse = m + jnp.log(jnp.sum(jnp.exp(logits - m), axis=-1, keepdims=True))

        # one-hot selection of the target logit and the per-sample class weight
        col = jax.lax.broadcasted_iota(jnp.int32, logits.shape, 1)
        onehot = col == tgt                                             # (TILE_N, C)
        tgt_logit = jnp.sum(jnp.where(onehot, logits, 0.0), axis=-1, keepdims=True)
        w_i = jnp.sum(jnp.where(onehot, w, 0.0), axis=-1, keepdims=True)

        nll = lse - tgt_logit                                           # (TILE_N, 1)

        if ragged:
            # Last tile overhangs the batch: out-of-range rows hold undefined
            # data (possibly inf/NaN), so mask BOTH nll and the weight.
            row = (pl.program_id(0) * tile_n
                   + jax.lax.broadcasted_iota(jnp.int32, (tile_n, 1), 0))
            valid = row < n_rows
            w_i = jnp.where(valid, w_i, 0.0)
            nll = jnp.where(valid, nll, 0.0)

        loss_ref[...] = jnp.full((1, _LANES), jnp.sum(w_i * nll), jnp.float32)
        wsum_ref[...] = jnp.full((1, _LANES), jnp.sum(w_i), jnp.float32)

    return _ce_kernel


def cross_entropy_loss(logits, target, per_cls_weights=None, tile_n=None):
    """Pallas TPU implementation of F.cross_entropy(logits, target, weight=w)."""
    logits = jnp.asarray(logits)             # keep HBM dtype (bf16 stays bf16)
    n, c = logits.shape
    tgt = jnp.asarray(target, jnp.int32).reshape(n, 1)

    if per_cls_weights is None:
        w = jnp.ones((1, c), jnp.float32)
    else:
        w = jnp.asarray(per_cls_weights, jnp.float32).reshape(1, c)

    if tile_n is None:
        tile_n = _choose_tile_n(n, c, logits.dtype.itemsize)
    tile_n = max(8, (min(int(tile_n), _round_up(n, 8)) // 8) * 8)

    grid = pl.cdiv(n, tile_n)
    ragged = (n % tile_n) != 0       # no full-array jnp.pad copy: mask in-kernel

    loss_p, wsum_p = pl.pallas_call(
        _make_ce_kernel(n, tile_n, ragged),
        out_shape=(jax.ShapeDtypeStruct((grid, _LANES), jnp.float32),
                   jax.ShapeDtypeStruct((grid, _LANES), jnp.float32)),
        grid=(grid,),
        in_specs=[
            pl.BlockSpec((tile_n, c), lambda i: (i, 0)),   # streamed logits tile
            pl.BlockSpec((tile_n, 1), lambda i: (i, 0)),   # targets tile
            pl.BlockSpec((1, c), lambda i: (0, 0)),        # class weights (resident)
        ],
        out_specs=(pl.BlockSpec((1, _LANES), lambda i: (i, 0)),
                   pl.BlockSpec((1, _LANES), lambda i: (i, 0))),
        compiler_params=pltpu.CompilerParams(
            dimension_semantics=("parallel",),
            vmem_limit_bytes=48 * 1024 * 1024),
    )(logits, tgt, w)

    # Tiny final reduction in JAX; NaN when every selected weight is 0
    # (matches PyTorch behaviour).
    return jnp.sum(loss_p[:, 0]) / jnp.sum(wsum_p[:, 0])


def make_per_cls_weights(cls_num_list):
    """Deterministic re-implementation of the module's __init__ (reweight=True)."""
    cls_num_list = np.asarray(cls_num_list, dtype=np.float64)
    class_idx = cls_num_list != 0
    effective_num = 1.0 - np.power(0.999, cls_num_list)
    per_cls_weights = np.zeros_like(effective_num)
    per_cls_weights[class_idx] = (1.0 - 0.999) / effective_num[class_idx]
    per_cls_weights[class_idx] = (
        per_cls_weights[class_idx] / np.sum(per_cls_weights[class_idx])
        * class_idx.sum()
    )
    return per_cls_weights.astype(np.float32)


if __name__ == "__main__":
    key = jax.random.PRNGKey(0)
    k1, k2, k3, k4 = jax.random.split(key, 4)

    # reweight=True path, deterministic class-count list (one zero class).
    C = 16
    cls_num_list = [30, 2, 10, 5, 0, 8, 12, 3, 7, 20, 1, 4, 6, 9, 15, 11]
    per_cls_weights = make_per_cls_weights(cls_num_list)

    # --- case 1: small f32 batch (N=8, C=16), weighted + unweighted, grid=1 ---
    N = 8
    logits = jax.random.normal(k1, (N, C), dtype=jnp.float32)
    target = jax.random.randint(k2, (N,), 0, C, dtype=jnp.int32)

    loss_weighted = cross_entropy_loss(logits, target, per_cls_weights)
    loss_plain = cross_entropy_loss(logits, target, None)

    logp = jax.nn.log_softmax(logits, axis=-1)
    nll = -logp[jnp.arange(N), target]
    w_sel = jnp.asarray(per_cls_weights)[target]
    ref_weighted = jnp.sum(w_sel * nll) / jnp.sum(w_sel)
    ref_plain = jnp.mean(nll)

    # --- case 2: bf16 logits, N not a tile multiple (ragged last tile, grid=3) ---
    N2 = 40
    logits2 = jax.random.normal(k3, (N2, C), dtype=jnp.float32).astype(jnp.bfloat16)
    target2 = jax.random.randint(k4, (N2,), 0, C, dtype=jnp.int32)
    loss2 = cross_entropy_loss(logits2, target2, per_cls_weights, tile_n=16)

    # --- case 3: same data, auto tile (megacore split -> grid=2, ragged) ---
    loss3 = cross_entropy_loss(logits2, target2, per_cls_weights)

    logits2_f32 = logits2.astype(jnp.float32)
    logp2 = jax.nn.log_softmax(logits2_f32, axis=-1)
    nll2 = -logp2[jnp.arange(N2), target2]
    w2 = jnp.asarray(per_cls_weights)[target2]
    ref2 = jnp.sum(w2 * nll2) / jnp.sum(w2)

    jax.block_until_ready((loss_weighted, loss_plain, loss2, loss3))

    assert jnp.allclose(loss_weighted, ref_weighted, rtol=1e-5, atol=1e-5)
    assert jnp.allclose(loss_plain, ref_plain, rtol=1e-5, atol=1e-5)
    assert jnp.allclose(loss2, ref2, rtol=1e-4, atol=1e-4)
    assert jnp.allclose(loss3, ref2, rtol=1e-4, atol=1e-4)

    print("KERNEL_OK")
</pallas_src>

<mosaic_0001>
module attributes {stable_mosaic.version = 11 : i64} {
  func.func @_ce_kernel(%arg0: i32, %arg1: memref<8x16xf32, #tpu.memory_space<vmem>>, %arg2: memref<8x1xi32, #tpu.memory_space<vmem>>, %arg3: memref<1x16xf32, #tpu.memory_space<vmem>>, %arg4: memref<1x128xf32, #tpu.memory_space<vmem>>, %arg5: memref<1x128xf32, #tpu.memory_space<vmem>>) attributes {dimension_semantics = [#tpu.dimension_semantics<parallel>], iteration_bounds = array<i64: 1>, scalar_prefetch = 0 : i64, scratch_operands = 0 : i64, tpu.core_type = #tpu.core_type<tc>, window_params = [{transform_indices = @transform_0, window_bounds = array<i64: 8, 16>}, {transform_indices = @transform_1, window_bounds = array<i64: 8, 1>}, {pipeline_mode = #tpu.pipeline_mode<synchronous>, transform_indices = @transform_2, window_bounds = array<i64: 1, 16>}, {transform_indices = @transform_3, window_bounds = array<i64: 1, 128>}, {transform_indices = @transform_4, window_bounds = array<i64: 1, 128>}]} {
    %c0 = arith.constant 0 : index
    %c0_0 = arith.constant 0 : index
    %0 = vector.load %arg1[%c0, %c0_0] : memref<8x16xf32, #tpu.memory_space<vmem>>, vector<8x16xf32>
    %c0_1 = arith.constant 0 : index
    %c0_2 = arith.constant 0 : index
    %1 = vector.load %arg2[%c0_1, %c0_2] : memref<8x1xi32, #tpu.memory_space<vmem>>, vector<8x1xi32>
    %c0_3 = arith.constant 0 : index
    %c0_4 = arith.constant 0 : index
    %2 = vector.load %arg3[%c0_3, %c0_4] : memref<1x16xf32, #tpu.memory_space<vmem>>, vector<1x16xf32>
    %cst = arith.constant dense<0xFF800000> : vector<8xf32>
    %3 = vector.multi_reduction <maximumf>, %0, %cst [1] : vector<8x16xf32> to vector<8xf32>
    %4 = vector.shape_cast %3 : vector<8xf32> to vector<8x1xf32>
    %5 = vector.broadcast %4 : vector<8x1xf32> to vector<8x16xf32>
    %6 = arith.subf %0, %5 : vector<8x16xf32>
    %7 = math.exp %6 : vector<8x16xf32>
    %cst_5 = arith.constant dense<0.000000e+00> : vector<8xf32>
    %8 = vector.multi_reduction <add>, %7, %cst_5 [1] : vector<8x16xf32> to vector<8xf32>
    %9 = vector.shape_cast %8 : vector<8xf32> to vector<8x1xf32>
    %10 = math.log %9 : vector<8x1xf32>
    %11 = arith.addf %4, %10 : vector<8x1xf32>
    %12 = tpu.iota {dimensions = array<i32: 1>} : vector<8x16xi32>
    %13 = vector.broadcast %1 : vector<8x1xi32> to vector<8x16xi32>
    %14 = arith.cmpi eq, %12, %13 : vector<8x16xi32>
    %cst_6 = arith.constant 0.000000e+00 : f32
    %15 = vector.broadcast %cst_6 : f32 to vector<8x16xf32>
    %16 = arith.select %14, %0, %15 : vector<8x16xi1>, vector<8x16xf32>
    %cst_7 = arith.constant dense<0.000000e+00> : vector<8xf32>
    %17 = vector.multi_reduction <add>, %16, %cst_7 [1] : vector<8x16xf32> to vector<8xf32>
    %18 = vector.shape_cast %17 : vector<8xf32> to vector<8x1xf32>
    %cst_8 = arith.constant 0.000000e+00 : f32
    %19 = vector.shape_cast %2 : vector<1x16xf32> to vector<1x16xf32>
    %20 = vector.broadcast %19 : vector<1x16xf32> to vector<8x16xf32>
    %21 = vector.broadcast %cst_8 : f32 to vector<8x16xf32>
    %22 = arith.select %14, %20, %21 : vector<8x16xi1>, vector<8x16xf32>
    %cst_9 = arith.constant dense<0.000000e+00> : vector<8xf32>
    %23 = vector.multi_reduction <add>, %22, %cst_9 [1] : vector<8x16xf32> to vector<8xf32>
    %24 = vector.shape_cast %23 : vector<8xf32> to vector<8x1xf32>
    %25 = arith.subf %11, %18 : vector<8x1xf32>
    %26 = arith.mulf %24, %25 : vector<8x1xf32>
    %27 = vector.shape_cast %26 : vector<8x1xf32> to vector<1x8x1xf32>
    %cst_10 = arith.constant dense<0.000000e+00> : vector<1xf32>
    %28 = vector.multi_reduction <add>, %27, %cst_10 [1, 2] : vector<1x8x1xf32> to vector<1xf32>
    %29 = vector.shape_cast %28 : vector<1xf32> to vector<1x1x1xf32>
    %30 = vector.extract %29[0, 0, 0] : f32 from vector<1x1x1xf32>
    %31 = vector.broadcast %30 : f32 to vector<1x128xf32>
    %c0_11 = arith.constant 0 : index
    %c0_12 = arith.constant 0 : index
    %32 = vector.load %arg4[%c0_11, %c0_12] : memref<1x128xf32, #tpu.memory_space<vmem>>, vector<1x128xf32>
    tpu.vector_store %arg4[%c0_11, %c0_12], %31 {strides = array<i32>} : memref<1x128xf32, #tpu.memory_space<vmem>>, vector<1x128xf32>,
    %33 = vector.shape_cast %24 : vector<8x1xf32> to vector<1x8x1xf32>
    %cst_13 = arith.constant dense<0.000000e+00> : vector<1xf32>
    %34 = vector.multi_reduction <add>, %33, %cst_13 [1, 2] : vector<1x8x1xf32> to vector<1xf32>
    %35 = vector.shape_cast %34 : vector<1xf32> to vector<1x1x1xf32>
    %36 = vector.extract %35[0, 0, 0] : f32 from vector<1x1x1xf32>
    %37 = vector.broadcast %36 : f32 to vector<1x128xf32>
    %c0_14 = arith.constant 0 : index
    %c0_15 = arith.constant 0 : index
    %38 = vector.load %arg5[%c0_14, %c0_15] : memref<1x128xf32, #tpu.memory_space<vmem>>, vector<1x128xf32>
    tpu.vector_store %arg5[%c0_14, %c0_15], %37 {strides = array<i32>} : memref<1x128xf32, #tpu.memory_space<vmem>>, vector<1x128xf32>,
    return
  }
  func.func @transform_0(%arg0: i32) -> (i32, i32) {
    %c0_i32 = arith.constant 0 : i32
    %c0_i32_0 = arith.constant 0 : i32
    return %arg0, %c0_i32 : i32, i32
  }
  func.func @transform_1(%arg0: i32) -> (i32, i32) {
    %c0_i32 = arith.constant 0 : i32
    %c0_i32_0 = arith.constant 0 : i32
    return %arg0, %c0_i32 : i32, i32
  }
  func.func @transform_2(%arg0: i32) -> (i32, i32) {
    %c0_i32 = arith.constant 0 : i32
    %c0_i32_0 = arith.constant 0 : i32
    %c0_i32_1 = arith.constant 0 : i32
    return %c0_i32, %c0_i32_0 : i32, i32
  }
  func.func @transform_3(%arg0: i32) -> (i32, i32) {
    %c0_i32 = arith.constant 0 : i32
    %c0_i32_0 = arith.constant 0 : i32
    return %arg0, %c0_i32 : i32, i32
  }
  func.func @transform_4(%arg0: i32) -> (i32, i32) {
    %c0_i32 = arith.constant 0 : i32
    %c0_i32_0 = arith.constant 0 : i32
    return %arg0, %c0_i32 : i32, i32
  }
}

</mosaic_0001>

<bundles_post_ra>
// kernel: tpu_custom_call.1
= control target key start
LH: loop header
LB: loop body
LE: loop exit
PB: predicated region body
PF: predicated region fallthrough
CT: control target
= control target key end

     0   :  { %10 = vsyncpa [#allocation3], 0  ;;  %vm21_vm0 = vcmask 130048   ;;  %s235_s0 = inlined_call_operand.vmem [shape: f32[8,16], index: 0, kind: input, shape index: {}]   ;;  %s236_s1 = inlined_call_operand.vmem [shape: s32[8,1], index: 1, kind: input, shape index: {}]   ;;  %s237_s2 = inlined_call_operand.vmem [shape: f32[1,16], index: 2, kind: input, shape index: {}]   ;;  %s238_s3 = inlined_call_operand.hbm [shape: f32[1,128], index: 3, kind: output, shape index: {0}]   ;;  %s239_s4 = inlined_call_operand.hbm [shape: f32[1,128], index: 4, kind: output, shape index: {1}]  }
   0x1   :  { %v18_v0 = vld [vmem:[%s235_s0] sm:$0xff] }
   0x2   :  { %11 = vsyncpa [#allocation5], 0  ;;  %v22_v1 = vsel %vm21_vm0, %v18_v0, -inf  ;;  %v170_v2 = vmov 0   ;;  %v19_v3 = vld [vmem:[%s236_s1] sm:$0xff]  ;;  %v34_v7 = vlaneseq  ;;  %vm56_vm2 = vcmask 7168  }
   0x3   :  { %117 = vset.pattern.permute.xlu0 %v170_v2  ;;  %v109_v13 = vld [vmem:[%s237_s2] ss:$0 sm:$0xff]  ;;  %s171_s1 = smov [#allocation2]   ;;  %s172_s21 = smov [#allocation4]  }
   0x4   :  { %23 = vmax.xlane.f32.xlu0 %v22_v1  ;;  %v35_v8 = vand.u32 127, %v34_v7  ;;  %s87_s2 = sshll.u32 %s171_s1, 4  ;;  %s97_s22 = sshll.u32 %s172_s21, 4  ;;  %s88_s2 = int_to_ptr.vmem [resolvable:$true] %s87_s2  ;;  %s98_s22 = int_to_ptr.vmem [resolvable:$true] %s97_s22 }
   0x5   :  { %s122_s23 = scalar_lea.vmem %s88_s2, 16  ;;  %s126_s24 = scalar_lea.vmem %s88_s2, 32 }
   0x6   :  { %p123_p0 = scmp.ne.s32.totalorder %s88_s2, %s122_s23  ;;  %p127_p1 = scmp.lt.s32.totalorder %s88_s2, %s88_s2 }
   0x7   :  { %p128_p2 = scmp.lt.s32.totalorder %s126_s24, %s122_s23 }
   0x9   :  { %p129_p3 = por %p128_p2, %p127_p1 }
   0xb   :  { %p130_p4 = pnand %p129_p3, %p123_p0 }
  0x1a   :  { %37 = vperm.xlu0 %117, %v19_v3  }
  0x91   :  { %v24_v4 = vpop.xlane.xlu0 %23 }
  0x92   :  { %v25_v5 = vsub.f32 %v18_v0, %v24_v4 }
  0x94   :  { %v26_v6 = vmul.f32 1.442695, %v25_v5 }
  0x96   :  { %118 = vpow2.f32 %v26_v6 }
  0x99   :  { %v38_v9 = vpop.permute.xlu0 %37 }
  0x9a   :  { %vm39_vm1 = vcmp.eq.s32.totalorder %v35_v8, %v38_v9 }
  0x9b   :  { %v40_v11 = vsel %vm39_vm1, %v18_v0, 0.0  ;;  %v50_v15 = vsel %vm39_vm1, %v109_v13, 0.0 }
  0x9c   :  { %v41_v14 = vsel %vm21_vm0, %v40_v11, 0.0  ;;  %v51_v16 = vsel %vm21_vm0, %v50_v15, 0.0 }
  0xa0   :  { %v119_v10 = vpop.eup %118 }
  0xa1   :  { %v28_v12 = vsel %vm21_vm0, %v119_v10, 0.0 }
  0xa2   :  { %29 = vadd.xlane.f32.xlu1 %v28_v12 }
  0xa6   :  { %42 = vadd.xlane.f32.xlu1 %v41_v14 }
  0xaa   :  { %52 = vadd.xlane.f32.xlu1 %v51_v16 }
 0x12f   :  { %v30_v17 = vpop.xlane.xlu1 %29 }
 0x130   :  { %120 = vlog2.f32 %v30_v17 }
 0x133   :  { %v43_v19 = vpop.xlane.xlu1 %42 }
 0x137   :  { %v53_v23 = vpop.xlane.xlu1 %52 }
 0x138   :  { %v69_v26 = vsel %vm56_vm2, %v53_v23, 0.0 }
 0x13a   :  { %v121_v18 = vpop.eup %120 }
 0x13b   :  { %v32_v20 = vmul.f32 0.6931472, %v121_v18 }
 0x13d   :  { %v33_v21 = vadd.f32 %v32_v20, %v24_v4 }
 0x13f   :  { %v54_v22 = vsub.f32 %v33_v21, %v43_v19 }
 0x141   :  { %v55_v24 = vmul.f32 %v54_v22, %v53_v23 }
 0x143   :  { %v57_v25 = vsel %vm56_vm2, %v55_v24, 0.0 }
 0x144   :  { %58 = vadd.xlane.f32.xlu1 %v57_v25 }
 0x148   :  { %70 = vadd.xlane.f32.xlu1 %v69_v26 }
 0x1d1   :  { %v59_v27 = vpop.xlane.xlu1 %58 }
 0x1d2   :  { %v60_v28 = vrot.slane %v59_v27, 4 }
 0x1d4   :  { %v61_v29 = vadd.f32 %v60_v28, %v59_v27 }
 0x1d5   :  { %v71_v30 = vpop.xlane.xlu1 %70 }
 0x1d6   :  { %v62_v31 = vrot.slane %v61_v29, 2  ;;  %v72_v32 = vrot.slane %v71_v30, 4 }
 0x1d8   :  { %v73_v33 = vadd.f32 %v72_v32, %v71_v30  ;;  %v63_v34 = vadd.f32 %v62_v31, %v61_v29 }
 0x1da   :  { %v74_v35 = vrot.slane %v73_v33, 2  ;;  %v64_v36 = vrot.slane %v63_v34, 1 }
 0x1dc   :  { %v75_v37 = vadd.f32 %v74_v35, %v73_v33  ;;  %v65_v38 = vadd.f32 %v64_v36, %v63_v34 }
 0x1de   :  { %110 = vpush %v65_v38  ;;  %v76_v39 = vrot.slane %v75_v37, 1 }
 0x1e0   :  { %v77_v40 = vadd.f32 %v76_v39, %v75_v37 }
 0x1e2   :  { %112 = vpush %v77_v40 }
 0x20f   :  { %s111_s20 = spop %110 }
 0x210   :  { %v67_v41 = vstv %s111_s20 }
 0x211   :  { %68 = vst [vmem:[#allocation2] sm:$0x1] %v67_v41 }
 0x212   :  { %133 = shalt.err (!%p130_p4)
}
 0x213   :  { %s134_s27 = scalar_lea.hbm %s238_s3, 16 }
 0x214   :  { %p135_p5 = scmp.ne.s32.totalorder %s238_s3, %s134_s27  ;;  %p138_p6 = scmp.lt.u32.totalorder %s134_s27, %s238_s3 }
 0x216   :  { %p140_p7 = pnand %p138_p6, %p135_p5 }
 0x218   :  { %143 = shalt.err (!%p140_p7)
}
 0x219   :  { %90 = dma.vmem_to_hbm [thread:$0]  %s88_s2, 16, %s238_s3, [#allocation3]  }
 0x21a   :  { %s113_s8 = spop %112  ;;  %s144_s9 = scalar_lea.vmem %s98_s22, 16 }
 0x21b   :  { %v79_v42 = vstv %s113_s8  ;;  %p145_p8 = scmp.ne.s32.totalorder %s98_s22, %s144_s9  ;;  %s148_s10 = scalar_lea.vmem %s98_s22, 32 }
 0x21c   :  { %80 = vst [vmem:[#allocation4] sm:$0x1] %v79_v42  ;;  %p149_p9 = scmp.lt.s32.totalorder %s98_s22, %s98_s22  ;;  %p150_p10 = scmp.lt.s32.totalorder %s148_s10, %s144_s9 }
 0x21e   :  { %p151_p11 = por %p150_p10, %p149_p9 }
 0x220   :  { %p152_p12 = pnand %p151_p11, %p145_p8 }
 0x222   :  { %155 = shalt.err (!%p152_p12)
}
 0x223   :  { %s156_s13 = scalar_lea.hbm %s239_s4, 16 }
 0x224   :  { %p157_p13 = scmp.ne.s32.totalorder %s239_s4, %s156_s13  ;;  %p160_p0 = scmp.lt.u32.totalorder %s156_s13, %s239_s4 }
 0x226   :  { %p162_p1 = pnand %p160_p0, %p157_p13 }
 0x228   :  { %165 = shalt.err (!%p162_p1)
}
 0x229   :  { %100 = dma.vmem_to_hbm [thread:$0]  %s98_s22, 16, %s239_s4, [#allocation5]  }
 0x22a   :  { %166 = dma.done.wait [#allocation3], 16  }
 0x22b   :  { %167 = vsyncadd [#allocation3], 4294967280 }
 0x22c   :  { %168 = dma.done.wait [#allocation5], 16  }
 0x22d   :  { %169 = vsyncadd [#allocation5], 4294967280 }
 0x22e   :  { %107 = vsyncpa [#allocation3], 1 }
 0x22f   :  { %108 = vsyncpa [#allocation5], 1 }

</bundles_post_ra>
